<compile_context>
chip_gen: v7x
topology: tpu7x:2x2x1
jax: 0.10.0
libtpu: 0.0.40
codegen_flags: <defaults>
</compile_context>

<pallas_src>
import math
import jax
import jax.numpy as jnp
from jax import lax
from jax.experimental import pallas as pl
from jax.experimental.pallas import tpu as pltpu


_INV_SQRT2 = 1.0 / math.sqrt(2.0)


def _ffn_kernel(x_ref, w1_ref, b1_ref, w2_ref, b2_ref, o_ref, acc_ref):
    # Grid: (row_tile index i [parallel], hidden_tile index k [arbitrary/reduction])
    # x_ref:  (tile_rows, Dp)
    # w1_ref: (Dp, tile_h)      b1_ref: (1, tile_h)
    # w2_ref: (tile_h, Dp)      b2_ref: (1, Dp)
    # o_ref:  (tile_rows, Dp)   acc_ref: (tile_rows, Dp) f32 scratch
    k = pl.program_id(1)
    nk = pl.num_programs(1)

    @pl.when(k == 0)
    def _():
        acc_ref[...] = jnp.zeros_like(acc_ref)

    # First linear, one hidden chunk: x @ W1[:, k-chunk] + b1[k-chunk]  (MXU, native dtype, f32 acc)
    h = jnp.dot(x_ref[...], w1_ref[...], preferred_element_type=jnp.float32)
    h = h + b1_ref[...].astype(jnp.float32)

    # Exact GELU (erf form — matches PyTorch nn.GELU default), in f32.
    h = 0.5 * h * (1.0 + lax.erf(h * _INV_SQRT2))

    # Partial second linear for this hidden chunk (Dropout p=0 is an identity).
    partial = jnp.dot(h.astype(w2_ref.dtype), w2_ref[...],
                      preferred_element_type=jnp.float32)

    total = acc_ref[...] + partial

    # Intermediate steps: store the running sum.  Last step: fold b2 in and write the output
    # tile directly, skipping the redundant accumulator writeback.
    @pl.when(k < nk - 1)
    def _():
        acc_ref[...] = total

    @pl.when(k == nk - 1)
    def _():
        o_ref[...] = (total + b2_ref[...].astype(jnp.float32)).astype(o_ref.dtype)


def _round_up(n, m):
    return ((n + m - 1) // m) * m


def feed_forward(x, w1, b1, w2, b2, *, tile_rows=256, tile_h=512):
    """x: [B, S, D].  w1: [D, H], b1: [H], w2: [H, D], b2: [D].  Returns [B, S, D]."""
    B, S, D = x.shape
    H = w1.shape[1]
    rows = B * S

    # Pad feature dims to lane-dense multiples of 128; pad rows to the (clamped) row tile.
    Dp = _round_up(D, 128)
    tile_h = _round_up(min(tile_h, _round_up(H, 128)), 128)
    Hp = _round_up(H, tile_h)                                   # multiple of tile_h (and of 128)
    tile_rows = min(_round_up(tile_rows, 128), _round_up(rows, 128))
    rows_p = _round_up(rows, tile_rows)

    x2d = jnp.pad(x.reshape(rows, D), ((0, rows_p - rows), (0, Dp - D)))
    w1p = jnp.pad(w1, ((0, Dp - D), (0, Hp - H)))
    b1p = jnp.pad(b1, ((0, Hp - H),)).reshape(1, Hp)
    w2p = jnp.pad(w2, ((0, Hp - H), (0, Dp - D)))
    b2p = jnp.pad(b2, ((0, Dp - D),)).reshape(1, Dp)

    n_row_tiles = rows_p // tile_rows
    n_h_tiles = Hp // tile_h

    # Scoped VMEM budget: double-buffered inputs/outputs + f32 accumulator + margin.
    itemsize = jnp.dtype(x.dtype).itemsize
    vmem_bytes = 2 * itemsize * (tile_rows * Dp            # x tile
                                 + Dp * tile_h + tile_h    # W1 tile + b1 tile
                                 + tile_h * Dp + Dp        # W2 tile + b2 tile
                                 + tile_rows * Dp)         # out tile
    vmem_bytes += 4 * tile_rows * Dp                       # f32 accumulator
    vmem_bytes = min(vmem_bytes + (4 << 20), 64 << 20)     # margin; cap for v7x (64 MiB/TC)

    cost = pl.CostEstimate(
        flops=4 * rows_p * Dp * Hp,                        # two matmuls
        transcendentals=rows_p * Hp,                       # erf on the hidden intermediate
        bytes_accessed=itemsize * (rows_p * Dp * 2 + Dp * Hp + Hp + Hp * Dp + Dp),
    )

    out2d = pl.pallas_call(
        _ffn_kernel,
        out_shape=jax.ShapeDtypeStruct((rows_p, Dp), x.dtype),
        grid_spec=pltpu.PrefetchScalarGridSpec(
            num_scalar_prefetch=0,
            grid=(n_row_tiles, n_h_tiles),                 # rows outer (parallel), H inner (reduction)
            in_specs=[
                pl.BlockSpec((tile_rows, Dp), lambda i, k: (i, 0)),  # x tile (resident across k)
                pl.BlockSpec((Dp, tile_h), lambda i, k: (0, k)),     # W1 hidden chunk
                pl.BlockSpec((1, tile_h), lambda i, k: (0, k)),      # b1 hidden chunk
                pl.BlockSpec((tile_h, Dp), lambda i, k: (k, 0)),     # W2 hidden chunk
                pl.BlockSpec((1, Dp), lambda i, k: (0, 0)),          # b2
            ],
            out_specs=pl.BlockSpec((tile_rows, Dp), lambda i, k: (i, 0)),
            scratch_shapes=[pltpu.VMEM((tile_rows, Dp), jnp.float32)],
        ),
        compiler_params=pltpu.CompilerParams(
            dimension_semantics=("parallel", "arbitrary"),
            vmem_limit_bytes=int(vmem_bytes),
        ),
        cost_estimate=cost,
    )(x2d, w1p, b1p, w2p, b2p)

    return out2d[:rows, :D].reshape(B, S, D)


def _reference(x, w1, b1, w2, b2):
    h = jnp.dot(x, w1) + b1
    h = 0.5 * h * (1.0 + lax.erf(h * _INV_SQRT2))
    return jnp.dot(h, w2) + b2


if __name__ == "__main__":
    # Small shapes consistent with a transformer FeedForward: dim=32, hidden_dim=64.
    B, S, D, H = 2, 8, 32, 64

    key = jax.random.PRNGKey(0)
    kx, k1, k2, k3, k4 = jax.random.split(key, 5)

    x = jax.random.normal(kx, (B, S, D), dtype=jnp.float32)

    # Deterministic parameter init mimicking PyTorch Linear default (U[-1/sqrt(fan_in), 1/sqrt(fan_in)]).
    lim1 = 1.0 / math.sqrt(D)
    lim2 = 1.0 / math.sqrt(H)
    w1 = jax.random.uniform(k1, (D, H), minval=-lim1, maxval=lim1, dtype=jnp.float32)
    b1 = jax.random.uniform(k2, (H,), minval=-lim1, maxval=lim1, dtype=jnp.float32)
    w2 = jax.random.uniform(k3, (H, D), minval=-lim2, maxval=lim2, dtype=jnp.float32)
    b2 = jax.random.uniform(k4, (D,), minval=-lim2, maxval=lim2, dtype=jnp.float32)

    # Defaults are clamped for the toy shapes (tile_rows -> 128, tile_h -> 128); large
    # shapes use the full 256 x 512 tiles.
    out = feed_forward(x, w1, b1, w2, b2)
    out = jax.block_until_ready(out)

    ref = _reference(x, w1, b1, w2, b2)
    assert out.shape == (B, S, D)
    assert jnp.allclose(out, ref, atol=1e-5, rtol=1e-5), "mismatch vs reference"

    print("KERNEL_OK")
</pallas_src>

<mosaic_0001>
module attributes {stable_mosaic.version = 11 : i64} {
  func.func @_ffn_kernel(%arg0: i32, %arg1: i32, %arg2: memref<128x128xf32, #tpu.memory_space<vmem>>, %arg3: memref<128x128xf32, #tpu.memory_space<vmem>>, %arg4: memref<1x128xf32, #tpu.memory_space<vmem>>, %arg5: memref<128x128xf32, #tpu.memory_space<vmem>>, %arg6: memref<1x128xf32, #tpu.memory_space<vmem>>, %arg7: memref<128x128xf32, #tpu.memory_space<vmem>>, %arg8: memref<128x128xf32, #tpu.memory_space<vmem>>) attributes {dimension_semantics = [#tpu.dimension_semantics<parallel>, #tpu.dimension_semantics<arbitrary>], iteration_bounds = array<i64: 1, 1>, scalar_prefetch = 0 : i64, scratch_operands = 1 : i64, tpu.core_type = #tpu.core_type<tc>, window_params = [{transform_indices = @transform_0, window_bounds = array<i64: 128, 128>}, {transform_indices = @transform_1, window_bounds = array<i64: 128, 128>}, {transform_indices = @transform_2, window_bounds = array<i64: 1, 128>}, {transform_indices = @transform_3, window_bounds = array<i64: 128, 128>}, {pipeline_mode = #tpu.pipeline_mode<synchronous>, transform_indices = @transform_4, window_bounds = array<i64: 1, 128>}, {transform_indices = @transform_5, window_bounds = array<i64: 128, 128>}]} {
    %c0_i32 = arith.constant 0 : i32
    %0 = arith.cmpi eq, %arg1, %c0_i32 : i32
    %1 = arith.extui %0 : i1 to i32
    %c0_i32_0 = arith.constant 0 : i32
    %2 = arith.cmpi ne, %1, %c0_i32_0 : i32
    scf.if %2 {
      %cst_18 = arith.constant 0.000000e+00 : f32
      %27 = vector.broadcast %cst_18 : f32 to vector<128x128xf32>
      %c0_19 = arith.constant 0 : index
      %c0_20 = arith.constant 0 : index
      %28 = vector.load %arg8[%c0_19, %c0_20] : memref<128x128xf32, #tpu.memory_space<vmem>>, vector<128x128xf32>
      tpu.vector_store %arg8[%c0_19, %c0_20], %27 {strides = array<i32>} : memref<128x128xf32, #tpu.memory_space<vmem>>, vector<128x128xf32>,
    } else {
    }
    %c0 = arith.constant 0 : index
    %c0_1 = arith.constant 0 : index
    %3 = vector.load %arg2[%c0, %c0_1] : memref<128x128xf32, #tpu.memory_space<vmem>>, vector<128x128xf32>
    %c0_2 = arith.constant 0 : index
    %c0_3 = arith.constant 0 : index
    %4 = vector.load %arg3[%c0_2, %c0_3] : memref<128x128xf32, #tpu.memory_space<vmem>>, vector<128x128xf32>
    %cst = arith.constant dense<0.000000e+00> : vector<128x128xf32>
    %5 = tpu.matmul %3, %4, %cst {dimension_numbers = #tpu.dot_dimension_numbers<[1], [0], [0], [1], [0, 0, 1, 1], [], []>} : vector<128x128xf32>, vector<128x128xf32>, vector<128x128xf32> -> vector<128x128xf32>
    %c0_4 = arith.constant 0 : index
    %c0_5 = arith.constant 0 : index
    %6 = vector.load %arg4[%c0_4, %c0_5] : memref<1x128xf32, #tpu.memory_space<vmem>>, vector<1x128xf32>
    %7 = vector.broadcast %6 : vector<1x128xf32> to vector<128x128xf32>
    %8 = arith.addf %5, %7 : vector<128x128xf32>
    %cst_6 = arith.constant 5.000000e-01 : f32
    %9 = vector.broadcast %cst_6 : f32 to vector<128x128xf32>
    %10 = arith.mulf %9, %8 : vector<128x128xf32>
    %cst_7 = arith.constant 0.707106769 : f32
    %11 = vector.broadcast %cst_7 : f32 to vector<128x128xf32>
    %12 = arith.mulf %8, %11 : vector<128x128xf32>
    %13 = math.erf %12 : vector<128x128xf32>
    %cst_8 = arith.constant 1.000000e+00 : f32
    %14 = vector.broadcast %cst_8 : f32 to vector<128x128xf32>
    %15 = arith.addf %14, %13 : vector<128x128xf32>
    %16 = arith.mulf %10, %15 : vector<128x128xf32>
    %c0_9 = arith.constant 0 : index
    %c0_10 = arith.constant 0 : index
    %17 = vector.load %arg5[%c0_9, %c0_10] : memref<128x128xf32, #tpu.memory_space<vmem>>, vector<128x128xf32>
    %cst_11 = arith.constant dense<0.000000e+00> : vector<128x128xf32>
    %18 = tpu.matmul %16, %17, %cst_11 {dimension_numbers = #tpu.dot_dimension_numbers<[1], [0], [0], [1], [0, 0, 1, 1], [], []>} : vector<128x128xf32>, vector<128x128xf32>, vector<128x128xf32> -> vector<128x128xf32>
    %c0_12 = arith.constant 0 : index
    %c0_13 = arith.constant 0 : index
    %19 = vector.load %arg8[%c0_12, %c0_13] : memref<128x128xf32, #tpu.memory_space<vmem>>, vector<128x128xf32>
    %20 = arith.addf %19, %18 : vector<128x128xf32>
    %c0_i32_14 = arith.constant 0 : i32
    %21 = arith.cmpi slt, %arg1, %c0_i32_14 : i32
    %22 = arith.extui %21 : i1 to i32
    %c0_i32_15 = arith.constant 0 : i32
    %23 = arith.cmpi ne, %22, %c0_i32_15 : i32
    scf.if %23 {
      %c0_18 = arith.constant 0 : index
      %c0_19 = arith.constant 0 : index
      %27 = vector.load %arg8[%c0_18, %c0_19] : memref<128x128xf32, #tpu.memory_space<vmem>>, vector<128x128xf32>
      tpu.vector_store %arg8[%c0_18, %c0_19], %20 {strides = array<i32>} : memref<128x128xf32, #tpu.memory_space<vmem>>, vector<128x128xf32>,
    } else {
    }
    %c0_i32_16 = arith.constant 0 : i32
    %24 = arith.cmpi eq, %arg1, %c0_i32_16 : i32
    %25 = arith.extui %24 : i1 to i32
    %c0_i32_17 = arith.constant 0 : i32
    %26 = arith.cmpi ne, %25, %c0_i32_17 : i32
    scf.if %26 {
      %c0_18 = arith.constant 0 : index
      %c0_19 = arith.constant 0 : index
      %27 = vector.load %arg6[%c0_18, %c0_19] : memref<1x128xf32, #tpu.memory_space<vmem>>, vector<1x128xf32>
      %28 = vector.broadcast %27 : vector<1x128xf32> to vector<128x128xf32>
      %29 = arith.addf %20, %28 : vector<128x128xf32>
      %c0_20 = arith.constant 0 : index
      %c0_21 = arith.constant 0 : index
      %30 = vector.load %arg7[%c0_20, %c0_21] : memref<128x128xf32, #tpu.memory_space<vmem>>, vector<128x128xf32>
      tpu.vector_store %arg7[%c0_20, %c0_21], %29 {strides = array<i32>} : memref<128x128xf32, #tpu.memory_space<vmem>>, vector<128x128xf32>,
    } else {
    }
    return
  }
  func.func @transform_0(%arg0: i32, %arg1: i32) -> (i32, i32) {
    %c0_i32 = arith.constant 0 : i32
    %c0_i32_0 = arith.constant 0 : i32
    return %arg0, %c0_i32 : i32, i32
  }
  func.func @transform_1(%arg0: i32, %arg1: i32) -> (i32, i32) {
    %c0_i32 = arith.constant 0 : i32
    %c0_i32_0 = arith.constant 0 : i32
    return %c0_i32, %arg1 : i32, i32
  }
  func.func @transform_2(%arg0: i32, %arg1: i32) -> (i32, i32) {
    %c0_i32 = arith.constant 0 : i32
    %c0_i32_0 = arith.constant 0 : i32
    return %c0_i32, %arg1 : i32, i32
  }
  func.func @transform_3(%arg0: i32, %arg1: i32) -> (i32, i32) {
    %c0_i32 = arith.constant 0 : i32
    %c0_i32_0 = arith.constant 0 : i32
    return %arg1, %c0_i32 : i32, i32
  }
  func.func @transform_4(%arg0: i32, %arg1: i32) -> (i32, i32) {
    %c0_i32 = arith.constant 0 : i32
    %c0_i32_0 = arith.constant 0 : i32
    %c0_i32_1 = arith.constant 0 : i32
    return %c0_i32, %c0_i32_0 : i32, i32
  }
  func.func @transform_5(%arg0: i32, %arg1: i32) -> (i32, i32) {
    %c0_i32 = arith.constant 0 : i32
    %c0_i32_0 = arith.constant 0 : i32
    return %arg0, %c0_i32 : i32, i32
  }
}

</mosaic_0001>

<bundles_post_ra>
// kernel: tpu_custom_call.1
= control target key start
LH: loop header
LB: loop body
LE: loop exit
PB: predicated region body
PF: predicated region fallthrough
CT: control target
= control target key end

     0   :  { %10 = vsyncpa [#allocation4], 0  ;;  %s1132_s0 = inlined_call_operand.hbm [shape: f32[128,128], index: 0, kind: input, shape index: {}]   ;;  %s1133_s1 = inlined_call_operand.hbm [shape: f32[128,128], index: 1, kind: input, shape index: {}]   ;;  %s1134_s2 = inlined_call_operand.vmem [shape: f32[1,128], index: 2, kind: input, shape index: {}]   ;;  %s1135_s3 = inlined_call_operand.hbm [shape: f32[128,128], index: 3, kind: input, shape index: {}]   ;;  %s1136_s4 = inlined_call_operand.vmem [shape: f32[1,128], index: 4, kind: input, shape index: {}]   ;;  %s1137_s5 = inlined_call_operand.hbm [shape: f32[128,128], index: 5, kind: output, shape index: {}]  }
   0x1   :  { %11 = vsyncpa [#allocation7], 0 }
   0x2   :  { %12 = vsyncpa [#allocation5], 0  ;;  %s993_s18 = smov [#allocation6]   ;;  %s994_s20 = smov [#allocation3]  }
   0x3   :  { %s30_s19 = sshll.u32 %s993_s18, 4  ;;  %s18_s21 = sshll.u32 %s994_s20, 4  ;;  %s31_s19 = int_to_ptr.vmem [resolvable:$true] %s30_s19  ;;  %s1029_s21 = int_to_ptr.vmem [resolvable:$true] %s18_s21 }
   0x4   :  { %s899_s24 = scalar_lea.hbm %s1133_s1, 2048 }
   0x5   :  { %p900_p0 = scmp.ne.s32.totalorder %s1133_s1, %s899_s24  ;;  %p903_p1 = scmp.lt.u32.totalorder %s899_s24, %s1133_s1 }
   0x7   :  { %p905_p2 = pnand %p903_p1, %p900_p0 }
   0x9   :  { %908 = shalt.err (!%p905_p2)
}
   0xa   :  { %s909_s29 = scalar_lea.vmem %s31_s19, 2048  ;;  %p914_p4 = scmp.lt.s32.totalorder %s31_s19, %s31_s19 }
   0xb   :  { %p910_p3 = scmp.ne.s32.totalorder %s31_s19, %s909_s29  ;;  %p915_p5 = scmp.lt.s32.totalorder %s909_s29, %s909_s29 }
   0xd   :  { %p916_p6 = por %p915_p5, %p914_p4 }
   0xf   :  { %p917_p7 = pnand %p916_p6, %p910_p3 }
  0x11   :  { %920 = shalt.err (!%p917_p7)
}
  0x12   :  { %s995_s30 = smov 128   ;;  %s996_s6 = smov 8  }
  0x13   :  { %36 = dma.hbm_to_vmem [thread:$0]  %s1133_s1, 2048, %s31_s19, [#allocation7], %s995_s30, %s995_s30, %s996_s6  }
  0x14   :  { %s921_s11 = scalar_lea.hbm %s1132_s0, 2048 }
  0x15   :  { %p922_p8 = scmp.ne.s32.totalorder %s1132_s0, %s921_s11  ;;  %p925_p9 = scmp.lt.u32.totalorder %s921_s11, %s1132_s0 }
  0x17   :  { %p927_p10 = pnand %p925_p9, %p922_p8 }
  0x19   :  { %930 = shalt.err (!%p927_p10)
}
  0x1a   :  { %s931_s16 = scalar_lea.vmem %s1029_s21, 2048  ;;  %p936_p12 = scmp.lt.s32.totalorder %s1029_s21, %s1029_s21 }
  0x1b   :  { %p932_p11 = scmp.ne.s32.totalorder %s1029_s21, %s931_s16  ;;  %p937_p13 = scmp.lt.s32.totalorder %s931_s16, %s931_s16 }
  0x1d   :  { %p938_p0 = por %p937_p13, %p936_p12 }
  0x1f   :  { %p939_p1 = pnand %p938_p0, %p932_p11 }
  0x21   :  { %942 = shalt.err (!%p939_p1)
}
  0x22   :  { %24 = dma.hbm_to_vmem [thread:$0]  %s1132_s0, 2048, %s1029_s21, [#allocation4], %s995_s30, %s995_s30, %s996_s6  }
  0x23   :  { %s997_s18 = smov [#allocation8]   ;;  %s943_s23 = scalar_lea.hbm %s1135_s3, 2048 }
  0x24   :  { %s44_s19 = sshll.u32 %s997_s18, 4  ;;  %p944_p2 = scmp.ne.s32.totalorder %s1135_s3, %s943_s23  ;;  %s45_s19 = int_to_ptr.vmem [resolvable:$true] %s44_s19 }
  0x25   :  { %p947_p3 = scmp.lt.u32.totalorder %s943_s23, %s1135_s3 }
  0x27   :  { %p949_p4 = pnand %p947_p3, %p944_p2 }
  0x29   :  { %952 = shalt.err (!%p949_p4)
}
  0x2a   :  { %s953_s28 = scalar_lea.vmem %s45_s19, 2048  ;;  %p958_p6 = scmp.lt.s32.totalorder %s45_s19, %s45_s19 }
  0x2b   :  { %p954_p5 = scmp.ne.s32.totalorder %s45_s19, %s953_s28  ;;  %p959_p7 = scmp.lt.s32.totalorder %s953_s28, %s953_s28 }
  0x2d   :  { %p960_p8 = por %p959_p7, %p958_p6 }
  0x2f   :  { %p961_p9 = pnand %p960_p8, %p954_p5 }
  0x31   :  { %964 = shalt.err (!%p961_p9)
}
  0x32   :  { %50 = dma.hbm_to_vmem [thread:$0]  %s1135_s3, 2048, %s45_s19, [#allocation7], %s995_s30, %s995_s30, %s996_s6  }
  0x33   :  { %987 = dma.done.wait [#allocation4], 2048  }
  0x34   :  { %988 = vsyncadd [#allocation4], 4294965248 }
  0x35   :  { %989 = dma.done.wait [#allocation7], 4096  }
  0x36   :  { %990 = vsyncadd [#allocation7], 4294963200  ;;  %v98_v0 = vld [vmem:[#allocation6] sm:$0xff]  ;;  %v99_v1 = vld [vmem:[#allocation6 + $0x8] sm:$0xff] }
  0x37   :  { %v100_v2 = vld [vmem:[#allocation6 + $0x10] sm:$0xff]  ;;  %v797_v3 = vpack.c.bf16 %v99_v1, %v98_v0  ;;  %v101_v4 = vld [vmem:[#allocation6 + $0x18] sm:$0xff]  ;;  %v102_v6 = vld [vmem:[#allocation6 + $0x20] sm:$0xff] }
  0x38   :  { %v801_v5 = vpack.c.bf16 %v101_v4, %v100_v2  ;;  %v103_v7 = vld [vmem:[#allocation6 + $0x28] sm:$0xff]  ;;  %v82_v9 = vld [vmem:[#allocation3] sm:$0xff]  ;;  %v104_v10 = vld [vmem:[#allocation6 + $0x30] sm:$0xff] }
  0x39   :  { %798 = vmatprep.subr.bf16.mxu0 %v797_v3  ;;  %v805_v8 = vpack.c.bf16 %v103_v7, %v102_v6  ;;  %v105_v11 = vld [vmem:[#allocation6 + $0x38] sm:$0xff]  ;;  %717 = vmatprep.mubr.f32.mxu0 %v82_v9  ;;  %v106_v13 = vld [vmem:[#allocation6 + $0x40] sm:$0xff]  ;;  %v107_v14 = vld [vmem:[#allocation6 + $0x48] sm:$0xff] }
  0x3a   :  { %800 = vmatpush3.bf16.msra.mxu0 %v797_v3  ;;  %v809_v12 = vpack.c.bf16 %v105_v11, %v104_v10  ;;  %v346_v15 = vld [vmem:[#allocation8] sm:$0xff]  ;;  %v347_v16 = vld [vmem:[#allocation8 + $0x8] sm:$0xff]  ;;  %v348_v17 = vld [vmem:[#allocation8 + $0x10] sm:$0xff]  ;;  %v813_v21 = vpack.c.bf16 %v107_v14, %v106_v13 }
  0x3b   :  { %802 = vmatprep.subr.bf16.mxu0 %v801_v5  ;;  %v349_v18 = vld [vmem:[#allocation8 + $0x18] sm:$0xff]  ;;  %v829_v19 = vpack.c.bf16 %v347_v16, %v346_v15  ;;  %v350_v22 = vld [vmem:[#allocation8 + $0x20] sm:$0xff]  ;;  %v351_v23 = vld [vmem:[#allocation8 + $0x28] sm:$0xff] }
  0x3c   :  { %v833_v20 = vpack.c.bf16 %v349_v18, %v348_v17  ;;  %v108_v24 = vld [vmem:[#allocation6 + $0x50] sm:$0xff]  ;;  %v109_v25 = vld [vmem:[#allocation6 + $0x58] sm:$0xff]  ;;  %v837_v26 = vpack.c.bf16 %v351_v23, %v350_v22  ;;  %v110_v28 = vld [vmem:[#allocation6 + $0x60] sm:$0xff] }
  0x3d   :  { %830 = vmatprep.subr.bf16.mxu1 %v829_v19  ;;  %v817_v27 = vpack.c.bf16 %v109_v25, %v108_v24  ;;  %v111_v29 = vld [vmem:[#allocation6 + $0x68] sm:$0xff]  ;;  %v112_v31 = vld [vmem:[#allocation6 + $0x70] sm:$0xff]  ;;  %v113_v32 = vld [vmem:[#allocation6 + $0x78] sm:$0xff] }
  0x3e   :  { %804 = vmatpush3.bf16.msra.mxu0 %v801_v5  ;;  %832 = vmatpush3.bf16.msra.mxu1 %v829_v19  ;;  %v821_v30 = vpack.c.bf16 %v111_v29, %v110_v28  ;;  %v825_v33 = vpack.c.bf16 %v113_v32, %v112_v31  ;;  %v83_v34 = vld [vmem:[#allocation3 + $0x8] sm:$0xff]  ;;  %v84_v35 = vld [vmem:[#allocation3 + $0x10] sm:$0xff]  ;;  %v85_v36 = vld [vmem:[#allocation3 + $0x18] sm:$0xff] }
  0x3f   :  { %806 = vmatprep.subr.bf16.mxu0 %v805_v8  ;;  %834 = vmatprep.subr.bf16.mxu1 %v833_v20  ;;  %v86_v37 = vld [vmem:[#allocation3 + $0x20] sm:$0xff]  ;;  %v87_v38 = vld [vmem:[#allocation3 + $0x28] sm:$0xff]  ;;  %v88_v39 = vld [vmem:[#allocation3 + $0x30] sm:$0xff] }
  0x40   :  { %v89_v40 = vld [vmem:[#allocation3 + $0x38] sm:$0xff]  ;;  %v90_v41 = vld [vmem:[#allocation3 + $0x40] sm:$0xff]  ;;  %v91_v42 = vld [vmem:[#allocation3 + $0x48] sm:$0xff] }
  0x41   :  { %v92_v43 = vld [vmem:[#allocation3 + $0x50] sm:$0xff]  ;;  %v93_v44 = vld [vmem:[#allocation3 + $0x58] sm:$0xff]  ;;  %v94_v45 = vld [vmem:[#allocation3 + $0x60] sm:$0xff] }
  0x42   :  { %808 = vmatpush3.bf16.msra.mxu0 %v805_v8  ;;  %836 = vmatpush3.bf16.msra.mxu1 %v833_v20  ;;  %v95_v46 = vld [vmem:[#allocation3 + $0x68] sm:$0xff]  ;;  %v96_v47 = vld [vmem:[#allocation3 + $0x70] sm:$0xff]  ;;  %v97_v48 = vld [vmem:[#allocation3 + $0x78] sm:$0xff] }
  0x43   :  { %810 = vmatprep.subr.bf16.mxu0 %v809_v12  ;;  %838 = vmatprep.subr.bf16.mxu1 %v837_v26  ;;  %v352_v49 = vld [vmem:[#allocation8 + $0x30] sm:$0xff]  ;;  %v353_v50 = vld [vmem:[#allocation8 + $0x38] sm:$0xff]  ;;  %v354_v52 = vld [vmem:[#allocation8 + $0x40] sm:$0xff] }
  0x44   :  { %v841_v51 = vpack.c.bf16 %v353_v50, %v352_v49  ;;  %v355_v53 = vld [vmem:[#allocation8 + $0x48] sm:$0xff]  ;;  %v356_v55 = vld [vmem:[#allocation8 + $0x50] sm:$0xff]  ;;  %v357_v56 = vld [vmem:[#allocation8 + $0x58] sm:$0xff] }
  0x45   :  { %v845_v54 = vpack.c.bf16 %v355_v53, %v354_v52  ;;  %v849_v57 = vpack.c.bf16 %v357_v56, %v356_v55  ;;  %v358_v58 = vld [vmem:[#allocation8 + $0x60] sm:$0xff]  ;;  %v359_v59 = vld [vmem:[#allocation8 + $0x68] sm:$0xff]  ;;  %v360_v61 = vld [vmem:[#allocation8 + $0x70] sm:$0xff] }
  0x46   :  { %812 = vmatpush3.bf16.msra.mxu0 %v809_v12  ;;  %840 = vmatpush3.bf16.msra.mxu1 %v837_v26  ;;  %v853_v60 = vpack.c.bf16 %v359_v59, %v358_v58  ;;  %v361_v62 = vld [vmem:[#allocation8 + $0x78] sm:$0xff]  ;;  %v1084_v0 = vld [vmem:[%s1134_s2] ss:$0 sm:$0xff] }
  0x47   :  { %814 = vmatprep.subr.bf16.mxu0 %v813_v21  ;;  %842 = vmatprep.subr.bf16.mxu1 %v841_v51  ;;  %v857_v63 = vpack.c.bf16 %v361_v62, %v360_v61 }
  0x4a   :  { %816 = vmatpush3.bf16.msra.mxu0 %v813_v21  ;;  %844 = vmatpush3.bf16.msra.mxu1 %v841_v51 }
  0x4b   :  { %818 = vmatprep.subr.bf16.mxu0 %v817_v27  ;;  %846 = vmatprep.subr.bf16.mxu1 %v845_v54 }
  0x4e   :  { %820 = vmatpush3.bf16.msra.mxu0 %v817_v27  ;;  %848 = vmatpush3.bf16.msra.mxu1 %v845_v54 }
  0x4f   :  { %822 = vmatprep.subr.bf16.mxu0 %v821_v30  ;;  %850 = vmatprep.subr.bf16.mxu1 %v849_v57 }
  0x52   :  { %824 = vmatpush3.bf16.msra.mxu0 %v821_v30  ;;  %852 = vmatpush3.bf16.msra.mxu1 %v849_v57 }
  0x53   :  { %826 = vmatprep.subr.bf16.mxu0 %v825_v33  ;;  %854 = vmatprep.subr.bf16.mxu1 %v853_v60 }
  0x56   :  { %828 = vmatpush3.bf16.msra.mxu0 %v825_v33  ;;  %856 = vmatpush3.bf16.msra.mxu1 %v853_v60 }
  0x57   :  { %858 = vmatprep.subr.bf16.mxu1 %v857_v63 }
  0x59   :  { %718 = vmatmul.mubr.f32.vlgmr.msra.gmra.mrb[0].mxu0 %v83_v34 }
  0x5a   :  { %720 = vmatprep.mubr.f32.mxu0 %v84_v35  ;;  %860 = vmatpush3.bf16.msra.mxu1 %v857_v63 }
  0x5d   :  { %721 = vmatmul.mubr.f32.gmra.mrb[2].mxu0 %v85_v36 }
  0x5e   :  { %723 = vmatprep.mubr.f32.mxu0 %v86_v37 }
  0x61   :  { %724 = vmatmul.mubr.f32.gmra.mrb[4].mxu0 %v87_v38 }
  0x62   :  { %726 = vmatprep.mubr.f32.mxu0 %v88_v39 }
  0x65   :  { %727 = vmatmul.mubr.f32.gmra.mrb[6].mxu0 %v89_v40 }
  0x66   :  { %729 = vmatprep.mubr.f32.mxu0 %v90_v41 }
  0x69   :  { %730 = vmatmul.mubr.f32.gmra.mrb[8].mxu0 %v91_v42 }
  0x6a   :  { %732 = vmatprep.mubr.f32.mxu0 %v92_v43 }
  0x6d   :  { %733 = vmatmul.mubr.f32.gmra.mrb[10].mxu0 %v93_v44 }
  0x6e   :  { %735 = vmatprep.mubr.f32.mxu0 %v94_v45 }
  0x71   :  { %736 = vmatmul.mubr.f32.gmra.mrb[12].mxu0 %v95_v46 }
  0x72   :  { %738 = vmatprep.mubr.f32.mxu0 %v96_v47 }
  0x75   :  { %739 = vmatmul.mubr.f32.gmra.mrb[14].mxu0 %v97_v48 }
 0x12c   :  { %v719_v1 = vpop.f32.mrb[0].mxu0 }
 0x12d   :  { %v193_v2 = vadd.f32 %v719_v1, %v1084_v0  ;;  %v187_v3 = vpop.f32.mrb[1].mxu0 }
 0x12e   :  { %v188_v4 = vadd.f32 %v1084_v0, %v187_v3 }
 0x12f   :  { %v283_v5 = vmul.f32 0.70710677, %v193_v2  ;;  %v267_v33 = vmul.f32 0.5, %v193_v2 }
 0x130   :  { %v282_v6 = vmul.f32 0.70710677, %v188_v4  ;;  %v722_v7 = vpop.f32.mrb[2].mxu0  ;;  %v266_v31 = vmul.f32 0.5, %v188_v4 }
 0x131   :  { %867 = verf.f32 %v283_v5  ;;  %v203_v8 = vadd.f32 %v722_v7, %v1084_v0  ;;  %v197_v9 = vpop.f32.mrb[3].mxu0 }
 0x132   :  { %869 = verf.f32 %v282_v6  ;;  %v198_v10 = vadd.f32 %v1084_v0, %v197_v9 }
 0x133   :  { %v285_v11 = vmul.f32 0.70710677, %v203_v8  ;;  %v269_v47 = vmul.f32 0.5, %v203_v8 }
 0x134   :  { %v284_v12 = vmul.f32 0.70710677, %v198_v10  ;;  %v725_v13 = vpop.f32.mrb[4].mxu0  ;;  %v268_v43 = vmul.f32 0.5, %v198_v10 }
 0x135   :  { %871 = verf.f32 %v285_v11  ;;  %v213_v14 = vadd.f32 %v725_v13, %v1084_v0  ;;  %v207_v15 = vpop.f32.mrb[5].mxu0 }
 0x136   :  { %873 = verf.f32 %v284_v12  ;;  %v208_v16 = vadd.f32 %v1084_v0, %v207_v15 }
 0x137   :  { %v287_v17 = vmul.f32 0.70710677, %v213_v14  ;;  %v271_v61 = vmul.f32 0.5, %v213_v14 }
 0x138   :  { %v286_v18 = vmul.f32 0.70710677, %v208_v16  ;;  %v728_v19 = vpop.f32.mrb[6].mxu0  ;;  %v270_v57 = vmul.f32 0.5, %v208_v16 }
 0x139   :  { %875 = verf.f32 %v287_v17  ;;  %v1093_v20 = vadd.f32 %v728_v19, %v1084_v0  ;;  %v217_v21 = vpop.f32.mrb[7].mxu0 }
 0x13a   :  { %877 = verf.f32 %v286_v18  ;;  %v218_v22 = vadd.f32 %v1084_v0, %v217_v21 }
 0x13b   :  { %v868_v23 = vpop.eup %867  ;;  %v289_v24 = vmul.f32 0.70710677, %v1093_v20  ;;  %v273_v12 = vmul.f32 0.5, %v1093_v20 }
 0x13c   :  { %v870_v25 = vpop.eup %869  ;;  %v315_v26 = vadd.f32 1.0, %v868_v23  ;;  %v288_v27 = vmul.f32 0.70710677, %v218_v22  ;;  %v731_v28 = vpop.f32.mrb[8].mxu0  ;;  %v272_v8 = vmul.f32 0.5, %v218_v22 }
 0x13d   :  { %879 = verf.f32 %v289_v24  ;;  %v1098_v29 = vadd.f32 %v731_v28, %v1084_v0  ;;  %v227_v30 = vpop.f32.mrb[9].mxu0  ;;  %v314_v32 = vadd.f32 1.0, %v870_v25 }
 0x13e   :  { %881 = verf.f32 %v288_v27  ;;  %v228_v34 = vadd.f32 %v1084_v0, %v227_v30  ;;  %v331_v42 = vmul.f32 %v315_v26, %v267_v33 }
 0x13f   :  { %v872_v35 = vpop.eup %871  ;;  %v291_v36 = vmul.f32 0.70710677, %v1098_v29  ;;  %v330_v37 = vmul.f32 %v314_v32, %v266_v31  ;;  %v275_v24 = vmul.f32 0.5, %v1098_v29 }
 0x140   :  { %v874_v38 = vpop.eup %873  ;;  %v317_v39 = vadd.f32 1.0, %v872_v35  ;;  %v290_v40 = vmul.f32 0.70710677, %v228_v34  ;;  %v734_v41 = vpop.f32.mrb[10].mxu0  ;;  %v274_v22 = vmul.f32 0.5, %v228_v34 }
 0x141   :  { %v316_v44 = vadd.f32 1.0, %v874_v38  ;;  %883 = verf.f32 %v291_v36  ;;  %v1103_v45 = vadd.f32 %v734_v41, %v1084_v0  ;;  %v237_v46 = vpop.f32.mrb[11].mxu0  ;;  %773 = vmatprep.mubr.f32.mxu1 %v330_v37 }
 0x142   :  { %885 = verf.f32 %v290_v40  ;;  %v238_v48 = vadd.f32 %v1084_v0, %v237_v46  ;;  %774 = vmatmul.mubr.f32.vlgmr.msra.gmra.mrb[0].mxu1 %v331_v42  ;;  %v333_v56 = vmul.f32 %v317_v39, %v269_v47 }
 0x143   :  { %v876_v49 = vpop.eup %875  ;;  %v293_v50 = vmul.f32 0.70710677, %v1103_v45  ;;  %v332_v51 = vmul.f32 %v316_v44, %v268_v43  ;;  %v277_v31 = vmul.f32 0.5, %v1103_v45 }
 0x144   :  { %v878_v52 = vpop.eup %877  ;;  %v319_v53 = vadd.f32 1.0, %v876_v49  ;;  %v292_v54 = vmul.f32 0.70710677, %v238_v48  ;;  %v737_v55 = vpop.f32.mrb[12].mxu0  ;;  %v276_v28 = vmul.f32 0.5, %v238_v48 }
 0x145   :  { %v318_v58 = vadd.f32 1.0, %v878_v52  ;;  %887 = verf.f32 %v293_v50  ;;  %v253_v59 = vadd.f32 %v737_v55, %v1084_v0  ;;  %v247_v60 = vpop.f32.mrb[13].mxu0  ;;  %776 = vmatprep.mubr.f32.mxu1 %v332_v51  ;;  %v620_v49 = vld [vmem:[%s1136_s4] ss:$0 sm:$0xff]  ;;  %s998_s4 = smov [#allocation9]  }
 0x146   :  { %889 = verf.f32 %v292_v54  ;;  %v248_v62 = vadd.f32 %v1084_v0, %v247_v60  ;;  %777 = vmatmul.mubr.f32.gmra.mrb[2].mxu1 %v333_v56  ;;  %v335_v7 = vmul.f32 %v319_v53, %v271_v61  ;;  %s606_s8 = sshll.u32 %s998_s4, 4  ;;  %s607_s8 = int_to_ptr.vmem [resolvable:$true] %s606_s8 }
 0x147   :  { %v880_v63 = vpop.eup %879  ;;  %v295_v1 = vmul.f32 0.70710677, %v253_v59  ;;  %v334_v2 = vmul.f32 %v318_v58, %v270_v57  ;;  %v279_v38 = vmul.f32 0.5, %v253_v59  ;;  %s965_s9 = scalar_lea.vmem %s607_s8, 2048  ;;  %p970_p11 = scmp.lt.s32.totalorder %s607_s8, %s607_s8 }
 0x148   :  { %v882_v3 = vpop.eup %881  ;;  %v321_v4 = vadd.f32 1.0, %v880_v63  ;;  %v294_v5 = vmul.f32 0.70710677, %v248_v62  ;;  %v740_v6 = vpop.f32.mrb[14].mxu0  ;;  %v278_v37 = vmul.f32 0.5, %v248_v62  ;;  %p966_p10 = scmp.ne.s32.totalorder %s607_s8, %s965_s9  ;;  %p971_p12 = scmp.lt.s32.totalorder %s965_s9, %s965_s9 }
 0x149   :  { %v320_v9 = vadd.f32 1.0, %v882_v3  ;;  %891 = verf.f32 %v295_v1  ;;  %v263_v10 = vadd.f32 %v740_v6, %v1084_v0  ;;  %v257_v11 = vpop.f32.mrb[15].mxu0  ;;  %779 = vmatprep.mubr.f32.mxu1 %v334_v2 }
 0x14a   :  { %893 = verf.f32 %v294_v5  ;;  %v258_v13 = vadd.f32 %v1084_v0, %v257_v11  ;;  %780 = vmatmul.mubr.f32.gmra.mrb[4].mxu1 %v335_v7  ;;  %v337_v21 = vmul.f32 %v321_v4, %v273_v12  ;;  %p972_p13 = por %p971_p12, %p970_p11 }
 0x14b   :  { %v884_v14 = vpop.eup %883  ;;  %v297_v15 = vmul.f32 0.70710677, %v263_v10  ;;  %v336_v16 = vmul.f32 %v320_v9, %v272_v8  ;;  %v281_v45 = vmul.f32 0.5, %v263_v10 }
 0x14c   :  { %v886_v17 = vpop.eup %885  ;;  %v323_v18 = vadd.f32 1.0, %v884_v14  ;;  %v296_v19 = vmul.f32 0.70710677, %v258_v13  ;;  %v280_v44 = vmul.f32 0.5, %v258_v13  ;;  %p973_p0 = pnand %p972_p13, %p966_p10 }
 0x14d   :  { %v322_v23 = vadd.f32 1.0, %v886_v17  ;;  %895 = verf.f32 %v297_v15  ;;  %782 = vmatprep.mubr.f32.mxu1 %v336_v16 }
 0x14e   :  { %897 = verf.f32 %v296_v19  ;;  %783 = vmatmul.mubr.f32.gmra.mrb[6].mxu1 %v337_v21  ;;  %v339_v27 = vmul.f32 %v323_v18, %v275_v24 }
 0x14f   :  { %v888_v20 = vpop.eup %887  ;;  %v338_v25 = vmul.f32 %v322_v23, %v274_v22 }
 0x150   :  { %v890_v26 = vpop.eup %889  ;;  %v325_v0 = vadd.f32 1.0, %v888_v20 }
 0x151   :  { %v324_v30 = vadd.f32 1.0, %v890_v26  ;;  %785 = vmatprep.mubr.f32.mxu1 %v338_v25 }
 0x152   :  { %786 = vmatmul.mubr.f32.gmra.mrb[8].mxu1 %v339_v27  ;;  %v341_v36 = vmul.f32 %v325_v0, %v277_v31 }
 0x153   :  { %v892_v32 = vpop.eup %891  ;;  %v340_v33 = vmul.f32 %v324_v30, %v276_v28 }
 0x154   :  { %v894_v34 = vpop.eup %893  ;;  %v327_v35 = vadd.f32 1.0, %v892_v32 }
 0x155   :  { %v326_v29 = vadd.f32 1.0, %v894_v34  ;;  %788 = vmatprep.mubr.f32.mxu1 %v340_v33 }
 0x156   :  { %789 = vmatmul.mubr.f32.gmra.mrb[10].mxu1 %v341_v36  ;;  %v343_v43 = vmul.f32 %v327_v35, %v279_v38 }
 0x157   :  { %v896_v39 = vpop.eup %895  ;;  %v342_v40 = vmul.f32 %v326_v29, %v278_v37 }
 0x158   :  { %v898_v41 = vpop.eup %897  ;;  %v329_v42 = vadd.f32 1.0, %v896_v39 }
 0x159   :  { %v328_v46 = vadd.f32 1.0, %v898_v41  ;;  %791 = vmatprep.mubr.f32.mxu1 %v342_v40 }
 0x15a   :  { %792 = vmatmul.mubr.f32.gmra.mrb[12].mxu1 %v343_v43  ;;  %v345_v48 = vmul.f32 %v329_v42, %v281_v45 }
 0x15b   :  { %v344_v47 = vmul.f32 %v328_v46, %v280_v44 }
 0x15d   :  { %794 = vmatprep.mubr.f32.mxu1 %v344_v47 }
 0x15e   :  { %795 = vmatmul.mubr.f32.gmra.mrb[14].mxu1 %v345_v48 }
 0x215   :  { %v775_v50 = vpop.f32.mrb[0].mxu1 }
 0x216   :  { %v570_v51 = vadd.f32 %v775_v50, %v620_v49  ;;  %v428_v52 = vpop.f32.mrb[1].mxu1 }
 0x217   :  { %v569_v53 = vadd.f32 %v620_v49, %v428_v52 }
 0x218   :  { %586 = vst [vmem:[#allocation9 + $0x8] sm:$0xff] %v570_v51 }
 0x219   :  { %585 = vst [vmem:[#allocation9] sm:$0xff] %v569_v53  ;;  %v778_v54 = vpop.f32.mrb[2].mxu1 }
 0x21a   :  { %v572_v55 = vadd.f32 %v778_v54, %v620_v49  ;;  %v438_v56 = vpop.f32.mrb[3].mxu1 }
 0x21b   :  { %v571_v57 = vadd.f32 %v620_v49, %v438_v56 }
 0x21c   :  { %588 = vst [vmem:[#allocation9 + $0x18] sm:$0xff] %v572_v55 }
 0x21d   :  { %587 = vst [vmem:[#allocation9 + $0x10] sm:$0xff] %v571_v57  ;;  %v781_v58 = vpop.f32.mrb[4].mxu1 }
 0x21e   :  { %v574_v59 = vadd.f32 %v781_v58, %v620_v49  ;;  %v448_v60 = vpop.f32.mrb[5].mxu1 }
 0x21f   :  { %v573_v61 = vadd.f32 %v620_v49, %v448_v60 }
 0x220   :  { %590 = vst [vmem:[#allocation9 + $0x28] sm:$0xff] %v574_v59 }
 0x221   :  { %589 = vst [vmem:[#allocation9 + $0x20] sm:$0xff] %v573_v61  ;;  %v784_v62 = vpop.f32.mrb[6].mxu1 }
 0x222   :  { %v576_v63 = vadd.f32 %v784_v62, %v620_v49  ;;  %v458_v1 = vpop.f32.mrb[7].mxu1 }
 0x223   :  { %v575_v2 = vadd.f32 %v620_v49, %v458_v1 }
 0x224   :  { %592 = vst [vmem:[#allocation9 + $0x38] sm:$0xff] %v576_v63 }
 0x225   :  { %591 = vst [vmem:[#allocation9 + $0x30] sm:$0xff] %v575_v2  ;;  %v787_v3 = vpop.f32.mrb[8].mxu1 }
 0x226   :  { %v578_v4 = vadd.f32 %v787_v3, %v620_v49  ;;  %v468_v5 = vpop.f32.mrb[9].mxu1 }
 0x227   :  { %v577_v6 = vadd.f32 %v620_v49, %v468_v5 }
 0x228   :  { %594 = vst [vmem:[#allocation9 + $0x48] sm:$0xff] %v578_v4 }
 0x229   :  { %593 = vst [vmem:[#allocation9 + $0x40] sm:$0xff] %v577_v6  ;;  %v790_v7 = vpop.f32.mrb[10].mxu1 }
 0x22a   :  { %v580_v8 = vadd.f32 %v790_v7, %v620_v49  ;;  %v478_v9 = vpop.f32.mrb[11].mxu1 }
 0x22b   :  { %v579_v10 = vadd.f32 %v620_v49, %v478_v9 }
 0x22c   :  { %596 = vst [vmem:[#allocation9 + $0x58] sm:$0xff] %v580_v8 }
 0x22d   :  { %595 = vst [vmem:[#allocation9 + $0x50] sm:$0xff] %v579_v10  ;;  %v793_v11 = vpop.f32.mrb[12].mxu1 }
 0x22e   :  { %v582_v12 = vadd.f32 %v793_v11, %v620_v49  ;;  %v488_v13 = vpop.f32.mrb[13].mxu1 }
 0x22f   :  { %v581_v14 = vadd.f32 %v620_v49, %v488_v13 }
 0x230   :  { %598 = vst [vmem:[#allocation9 + $0x68] sm:$0xff] %v582_v12 }
 0x231   :  { %597 = vst [vmem:[#allocation9 + $0x60] sm:$0xff] %v581_v14  ;;  %v796_v15 = vpop.f32.mrb[14].mxu1 }
 0x232   :  { %v584_v16 = vadd.f32 %v796_v15, %v620_v49  ;;  %v498_v17 = vpop.f32.mrb[15].mxu1 }
 0x233   :  { %v583_v18 = vadd.f32 %v620_v49, %v498_v17 }
 0x234   :  { %600 = vst [vmem:[#allocation9 + $0x78] sm:$0xff] %v584_v16 }
 0x235   :  { %599 = vst [vmem:[#allocation9 + $0x70] sm:$0xff] %v583_v18 }
 0x236   :  { %976 = shalt.err (!%p973_p0)
}
 0x237   :  { %s977_s12 = scalar_lea.hbm %s1137_s5, 2048 }
 0x238   :  { %p978_p1 = scmp.ne.s32.totalorder %s1137_s5, %s977_s12  ;;  %p981_p2 = scmp.lt.u32.totalorder %s977_s12, %s1137_s5 }
 0x23a   :  { %p983_p3 = pnand %p981_p2, %p978_p1 }
 0x23c   :  { %986 = shalt.err (!%p983_p3)
}
 0x23d   :  { %612 = dma.vmem_to_hbm [thread:$0]  %s607_s8, 2048, %s1137_s5, [#allocation5], %s995_s30, %s995_s30, %s996_s6  }
 0x23e   :  { %991 = dma.done.wait [#allocation5], 2048  }
 0x23f   :  { %992 = vsyncadd [#allocation5], 4294965248 }
 0x240   :  { %616 = vsyncpa [#allocation4], 1 }
 0x241   :  { %617 = vsyncpa [#allocation7], 1 }
 0x242   :  { %618 = vsyncpa [#allocation5], 1 }

</bundles_post_ra>
